<compile_context>
chip_gen: v6e
topology: v6e:2x2x1
jax: 0.10.0
libtpu: 0.0.40
codegen_flags: <defaults>
</compile_context>

<pallas_src>
import jax
import jax.numpy as jnp
from jax.experimental import pallas as pl
from jax.experimental.pallas import tpu as pltpu

LANE = 128      # f32 vreg lane width: pad every feature dim to this
SUBLANE = 8     # f32 vreg sublane width: batch tiles must be a multiple of this


def _round_up(n, m):
    return ((n + m - 1) // m) * m


def _make_mlp_kernel(num_layers):
    """Fused MLP kernel: num_layers matmuls with ReLU between them.

    Biases are already folded into the augmented weights by the wrapper, so the
    body is a pure matmul/ReLU chain. Dots accumulate in f32 on the MXU; the
    activations are cast back to the operand dtype (no-op for f32) before the
    next dot so bf16 operands keep the fast MXU path on v6e/v7x.
    """
    def kernel(*refs):
        x_ref = refs[0]
        w_refs = refs[1:1 + num_layers]
        o_ref = refs[1 + num_layers]
        z = jnp.dot(x_ref[...], w_refs[0][...], preferred_element_type=jnp.float32)
        for w_ref in w_refs[1:]:
            z = jnp.maximum(z, 0.0)                      # ReLU in f32 (VPU)
            z = jnp.dot(z.astype(w_ref.dtype), w_ref[...],
                        preferred_element_type=jnp.float32)
        o_ref[...] = z.astype(o_ref.dtype)
    return kernel


def cvmlp_forward(x, params, *, mxu_dtype=None, tile_m=512):
    """CVMLP forward pass as one fused, batch-tiled Pallas kernel.

    x:      (batch, input_dim) float array.
    params: PyTorch-convention dict {"w1": (h0, in), "b1": (h0,), ...}.
    mxu_dtype: optional matmul-operand dtype (e.g. jnp.bfloat16 on v6e/v7x).
    tile_m: rows per grid step (rounded to a multiple of 8).
    """
    num_layers = sum(1 for k in params if k.startswith("w"))
    batch, input_dim = x.shape
    out_dtype = x.dtype
    op_dtype = mxu_dtype if mxu_dtype is not None else x.dtype

    # Lane padding per layer boundary. Non-final dims reserve one extra slot
    # for the "ones" column that carries the bias (affine augmentation).
    dims = [input_dim] + [params[f"w{i}"].shape[0] for i in range(1, num_layers + 1)]
    pad_dims = [_round_up(d + 1, LANE) for d in dims[:-1]] + [_round_up(dims[-1], LANE)]

    # Augmented, padded, transposed weights: (in_pad, out_pad).
    ws = []
    for i in range(1, num_layers + 1):
        w = params[f"w{i}"]            # (out, in)  PyTorch convention
        b = params[f"b{i}"]            # (out,)
        out_d, in_d = w.shape
        in_pad, out_pad = pad_dims[i - 1], pad_dims[i]
        w_aug = jnp.zeros((in_pad, out_pad), jnp.float32)
        w_aug = w_aug.at[:in_d, :out_d].set(w.T)
        w_aug = w_aug.at[in_d, :out_d].set(b)            # bias row
        if i < num_layers:
            w_aug = w_aug.at[in_d, out_d].set(1.0)       # propagate ones column
        ws.append(w_aug.astype(op_dtype))

    # Batch (sublane) tiling.
    tm = _round_up(min(tile_m, _round_up(batch, SUBLANE)), SUBLANE)
    b_pad = _round_up(batch, tm)
    k_pad, n_pad = pad_dims[0], pad_dims[-1]

    x_aug = jnp.zeros((b_pad, k_pad), jnp.float32)
    x_aug = x_aug.at[:batch, :input_dim].set(x.astype(jnp.float32))
    x_aug = x_aug.at[:, input_dim].set(1.0)              # ones column for layer-1 bias
    x_aug = x_aug.astype(op_dtype)

    grid = (b_pad // tm,)
    in_specs = [pl.BlockSpec((tm, k_pad), lambda i: (i, 0))]
    for w in ws:
        in_specs.append(pl.BlockSpec(w.shape, lambda i: (0, 0)))   # VMEM-resident
    out_specs = pl.BlockSpec((tm, n_pad), lambda i: (i, 0))

    out_padded = pl.pallas_call(
        _make_mlp_kernel(num_layers),
        out_shape=jax.ShapeDtypeStruct((b_pad, n_pad), out_dtype),
        grid=grid,
        in_specs=in_specs,
        out_specs=out_specs,
        compiler_params=pltpu.CompilerParams(
            dimension_semantics=("parallel",)),
    )(x_aug, *ws)

    return out_padded[:batch, :dims[-1]]


def init_params(key, input_dim, hidden_dims, output_dim):
    """PyTorch-style uniform init: U(-1/sqrt(fan_in), 1/sqrt(fan_in))."""
    dims = [input_dim] + list(hidden_dims) + [output_dim]
    params = {}
    for i in range(len(dims) - 1):
        fan_in, fan_out = dims[i], dims[i + 1]
        key, kw, kb = jax.random.split(key, 3)
        bound = 1.0 / jnp.sqrt(fan_in)
        params[f"w{i + 1}"] = jax.random.uniform(
            kw, (fan_out, fan_in), jnp.float32, -bound, bound)   # (out, in)
        params[f"b{i + 1}"] = jax.random.uniform(
            kb, (fan_out,), jnp.float32, -bound, bound)
    return params


def cvmlp_reference(x, params):
    z = x
    z = jnp.maximum(z @ params["w1"].T + params["b1"], 0.0)
    z = jnp.maximum(z @ params["w2"].T + params["b2"], 0.0)
    z = z @ params["w3"].T + params["b3"]
    return z


if __name__ == "__main__":
    # Shapes consistent with the module: 45 heavy-atom pairwise distances
    # + 1 temperature = 46 input features, two hidden layers, scalar CV output.
    input_dim = 46
    hidden_dims = (64, 64)
    output_dim = 1

    key = jax.random.PRNGKey(0)
    key, kx = jax.random.split(key)
    params = init_params(key, input_dim, hidden_dims, output_dim)

    # 1) Small batch, single grid step, f32 end-to-end.
    batch = 8
    x = jax.random.normal(kx, (batch, input_dim), jnp.float32)
    out = jax.block_until_ready(cvmlp_forward(x, params))
    ref = cvmlp_reference(x, params)
    assert out.shape == (batch, output_dim)
    assert jnp.allclose(out, ref, atol=1e-5, rtol=1e-5)

    # 2) Multi-step batch-parallel grid (tile_m=8 -> grid=(3,)) with padded
    #    tail rows, to exercise the tiled/pipelined path.
    batch2 = 20
    key, kx2 = jax.random.split(key)
    x2 = jax.random.normal(kx2, (batch2, input_dim), jnp.float32)
    out2 = jax.block_until_ready(cvmlp_forward(x2, params, tile_m=8))
    ref2 = cvmlp_reference(x2, params)
    assert out2.shape == (batch2, output_dim)
    assert jnp.allclose(out2, ref2, atol=1e-5, rtol=1e-5)

    # 3) bf16 MXU operands (v6e/v7x fast path) with f32 accumulation.
    out_bf16 = jax.block_until_ready(
        cvmlp_forward(x, params, mxu_dtype=jnp.bfloat16))
    assert out_bf16.shape == (batch, output_dim)
    assert jnp.allclose(out_bf16, ref, atol=1e-1, rtol=1e-1)

    # TODO(synk): coordinate2distance (pairwise heavy-atom distance
    # preprocessing) is not used in forward(); not implemented as a kernel.
    print("KERNEL_OK")
</pallas_src>

<mosaic_0001>
module attributes {stable_mosaic.version = 11 : i64} {
  func.func @kernel(%arg0: i32, %arg1: memref<8x128xf32, #tpu.memory_space<vmem>>, %arg2: memref<128x128xf32, #tpu.memory_space<vmem>>, %arg3: memref<128x128xf32, #tpu.memory_space<vmem>>, %arg4: memref<128x128xf32, #tpu.memory_space<vmem>>, %arg5: memref<8x128xf32, #tpu.memory_space<vmem>>) attributes {dimension_semantics = [#tpu.dimension_semantics<parallel>], iteration_bounds = array<i64: 1>, scalar_prefetch = 0 : i64, scratch_operands = 0 : i64, tpu.core_type = #tpu.core_type<tc>, window_params = [{transform_indices = @transform_0, window_bounds = array<i64: 8, 128>}, {pipeline_mode = #tpu.pipeline_mode<synchronous>, transform_indices = @transform_1, window_bounds = array<i64: 128, 128>}, {pipeline_mode = #tpu.pipeline_mode<synchronous>, transform_indices = @transform_2, window_bounds = array<i64: 128, 128>}, {pipeline_mode = #tpu.pipeline_mode<synchronous>, transform_indices = @transform_3, window_bounds = array<i64: 128, 128>}, {transform_indices = @transform_4, window_bounds = array<i64: 8, 128>}]} {
    %c0 = arith.constant 0 : index
    %c0_0 = arith.constant 0 : index
    %0 = vector.load %arg1[%c0, %c0_0] : memref<8x128xf32, #tpu.memory_space<vmem>>, vector<8x128xf32>
    %c0_1 = arith.constant 0 : index
    %c0_2 = arith.constant 0 : index
    %1 = vector.load %arg2[%c0_1, %c0_2] : memref<128x128xf32, #tpu.memory_space<vmem>>, vector<128x128xf32>
    %cst = arith.constant dense<0.000000e+00> : vector<8x128xf32>
    %2 = tpu.matmul %0, %1, %cst {dimension_numbers = #tpu.dot_dimension_numbers<[1], [0], [0], [1], [0, 0, 1, 1], [], []>} : vector<8x128xf32>, vector<128x128xf32>, vector<8x128xf32> -> vector<8x128xf32>
    %cst_3 = arith.constant 0.000000e+00 : f32
    %3 = vector.broadcast %cst_3 : f32 to vector<8x128xf32>
    %4 = arith.maximumf %2, %3 : vector<8x128xf32>
    %c0_4 = arith.constant 0 : index
    %c0_5 = arith.constant 0 : index
    %5 = vector.load %arg3[%c0_4, %c0_5] : memref<128x128xf32, #tpu.memory_space<vmem>>, vector<128x128xf32>
    %cst_6 = arith.constant dense<0.000000e+00> : vector<8x128xf32>
    %6 = tpu.matmul %4, %5, %cst_6 {dimension_numbers = #tpu.dot_dimension_numbers<[1], [0], [0], [1], [0, 0, 1, 1], [], []>} : vector<8x128xf32>, vector<128x128xf32>, vector<8x128xf32> -> vector<8x128xf32>
    %cst_7 = arith.constant 0.000000e+00 : f32
    %7 = vector.broadcast %cst_7 : f32 to vector<8x128xf32>
    %8 = arith.maximumf %6, %7 : vector<8x128xf32>
    %c0_8 = arith.constant 0 : index
    %c0_9 = arith.constant 0 : index
    %9 = vector.load %arg4[%c0_8, %c0_9] : memref<128x128xf32, #tpu.memory_space<vmem>>, vector<128x128xf32>
    %cst_10 = arith.constant dense<0.000000e+00> : vector<8x128xf32>
    %10 = tpu.matmul %8, %9, %cst_10 {dimension_numbers = #tpu.dot_dimension_numbers<[1], [0], [0], [1], [0, 0, 1, 1], [], []>} : vector<8x128xf32>, vector<128x128xf32>, vector<8x128xf32> -> vector<8x128xf32>
    %c0_11 = arith.constant 0 : index
    %c0_12 = arith.constant 0 : index
    %11 = vector.load %arg5[%c0_11, %c0_12] : memref<8x128xf32, #tpu.memory_space<vmem>>, vector<8x128xf32>
    tpu.vector_store %arg5[%c0_11, %c0_12], %10 {strides = array<i32>} : memref<8x128xf32, #tpu.memory_space<vmem>>, vector<8x128xf32>,
    return
  }
  func.func @transform_0(%arg0: i32) -> (i32, i32) {
    %c0_i32 = arith.constant 0 : i32
    %c0_i32_0 = arith.constant 0 : i32
    return %arg0, %c0_i32 : i32, i32
  }
  func.func @transform_1(%arg0: i32) -> (i32, i32) {
    %c0_i32 = arith.constant 0 : i32
    %c0_i32_0 = arith.constant 0 : i32
    %c0_i32_1 = arith.constant 0 : i32
    return %c0_i32, %c0_i32_0 : i32, i32
  }
  func.func @transform_2(%arg0: i32) -> (i32, i32) {
    %c0_i32 = arith.constant 0 : i32
    %c0_i32_0 = arith.constant 0 : i32
    %c0_i32_1 = arith.constant 0 : i32
    return %c0_i32, %c0_i32_0 : i32, i32
  }
  func.func @transform_3(%arg0: i32) -> (i32, i32) {
    %c0_i32 = arith.constant 0 : i32
    %c0_i32_0 = arith.constant 0 : i32
    %c0_i32_1 = arith.constant 0 : i32
    return %c0_i32, %c0_i32_0 : i32, i32
  }
  func.func @transform_4(%arg0: i32) -> (i32, i32) {
    %c0_i32 = arith.constant 0 : i32
    %c0_i32_0 = arith.constant 0 : i32
    return %arg0, %c0_i32 : i32, i32
  }
}

</mosaic_0001>

<bundles_post_ra>
// kernel: tpu_custom_call.1
= control target key start
LH: loop header
LB: loop body
LE: loop exit
PB: predicated region body
PF: predicated region fallthrough
CT: control target
= control target key end

     0   :  { %9 = vsyncpa [#allocation3], 0  ;;  %s735_s0 = inlined_call_operand.hbm [shape: f32[8,128], index: 0, kind: input, shape index: {}]   ;;  %s736_s1 = inlined_call_operand.hbm [shape: f32[128,128], index: 1, kind: input, shape index: {}]   ;;  %s737_s2 = inlined_call_operand.hbm [shape: f32[128,128], index: 2, kind: input, shape index: {}]   ;;  %s738_s3 = inlined_call_operand.hbm [shape: f32[128,128], index: 3, kind: input, shape index: {}]   ;;  %s739_s4 = inlined_call_operand.hbm [shape: f32[8,128], index: 4, kind: output, shape index: {}]  }
   0x1   :  { %10 = vsyncpa [#allocation6], 0 }
   0x2   :  { %11 = vsyncpa [#allocation9], 0 }
   0x3   :  { %12 = vsyncpa [#allocation4], 0  ;;  %s623_s15 = smov [#allocation5]  }
   0x4   :  { %s28_s16 = sshll.u32 %s623_s15, 4  ;;  %s29_s16 = int_to_ptr.vmem [resolvable:$true] %s28_s16 }
   0x5   :  { %s523_s17 = scalar_lea.vmem %s29_s16, 2048  ;;  %p528_p1 = scmp.lt.s32.totalorder %s29_s16, %s29_s16 }
   0x6   :  { %p524_p0 = scmp.ne.s32.totalorder %s29_s16, %s523_s17  ;;  %p529_p2 = scmp.lt.s32.totalorder %s523_s17, %s523_s17 }
   0x8   :  { %p530_p3 = por %p529_p2, %p528_p1 }
   0xa   :  { %p531_p4 = pnand %p530_p3, %p524_p0 }
   0xc   :  { %534 = shalt.err (!%p531_p4)
}
   0xd   :  { %s624_s18 = smov 128   ;;  %s625_s19 = smov 8  }
   0xe   :  { %34 = dma.hbm_to_vmem [thread:$0]  %s736_s1, 2048, %s29_s16, [#allocation6], %s624_s18, %s624_s18, %s625_s19  }
   0xf   :  { %s626_s22 = smov [#allocation2]   ;;  %s627_s24 = smov [#allocation7]  }
  0x10   :  { %s19_s23 = sshll.u32 %s626_s22, 4  ;;  %s40_s25 = sshll.u32 %s627_s24, 4  ;;  %s20_s23 = int_to_ptr.vmem [resolvable:$true] %s19_s23  ;;  %s41_s25 = int_to_ptr.vmem [resolvable:$true] %s40_s25 }
  0x11   :  { %s543_s26 = scalar_lea.vmem %s20_s23, 128  ;;  %p548_p6 = scmp.lt.s32.totalorder %s20_s23, %s20_s23 }
  0x12   :  { %p544_p5 = scmp.ne.s32.totalorder %s20_s23, %s543_s26  ;;  %p549_p7 = scmp.lt.s32.totalorder %s543_s26, %s543_s26 }
  0x14   :  { %p550_p8 = por %p549_p7, %p548_p6 }
  0x16   :  { %p551_p9 = pnand %p550_p8, %p544_p5 }
  0x18   :  { %554 = shalt.err (!%p551_p9)
}
  0x19   :  { %22 = dma.hbm_to_vmem [thread:$0]  %s735_s0, 128, %s20_s23, [#allocation3]  }
  0x1a   :  { %s563_s29 = scalar_lea.vmem %s41_s25, 2048  ;;  %p568_p11 = scmp.lt.s32.totalorder %s41_s25, %s41_s25 }
  0x1b   :  { %p564_p10 = scmp.ne.s32.totalorder %s41_s25, %s563_s29  ;;  %p569_p12 = scmp.lt.s32.totalorder %s563_s29, %s563_s29 }
  0x1d   :  { %p570_p13 = por %p569_p12, %p568_p11 }
  0x1f   :  { %p571_p0 = pnand %p570_p13, %p564_p10 }
  0x21   :  { %574 = shalt.err (!%p571_p0)
}
  0x22   :  { %46 = dma.hbm_to_vmem [thread:$0]  %s737_s2, 2048, %s41_s25, [#allocation6], %s624_s18, %s624_s18, %s625_s19  }
  0x23   :  { %s628_s5 = smov [#allocation8]  }
  0x24   :  { %s52_s6 = sshll.u32 %s628_s5, 4  ;;  %s53_s6 = int_to_ptr.vmem [resolvable:$true] %s52_s6 }
  0x25   :  { %s583_s7 = scalar_lea.vmem %s53_s6, 2048  ;;  %p588_p2 = scmp.lt.s32.totalorder %s53_s6, %s53_s6 }
  0x26   :  { %p584_p1 = scmp.ne.s32.totalorder %s53_s6, %s583_s7  ;;  %p589_p3 = scmp.lt.s32.totalorder %s583_s7, %s583_s7 }
  0x28   :  { %p590_p4 = por %p589_p3, %p588_p2 }
  0x2a   :  { %p591_p5 = pnand %p590_p4, %p584_p1 }
  0x2c   :  { %594 = shalt.err (!%p591_p5)
}
  0x2d   :  { %58 = dma.hbm_to_vmem [thread:$0]  %s738_s3, 2048, %s53_s6, [#allocation9], %s624_s18, %s624_s18, %s625_s19  }
  0x2e   :  { %615 = dma.done.wait [#allocation3], 128  }
  0x2f   :  { %616 = vsyncadd [#allocation3], 4294967168 }
  0x30   :  { %617 = dma.done.wait [#allocation6], 4096  }
  0x31   :  { %618 = vsyncadd [#allocation6], 4294963200 }
  0x32   :  { %619 = dma.done.wait [#allocation9], 2048  }
  0x33   :  { %620 = vsyncadd [#allocation9], 4294965248  ;;  %v629_v0 = vmov 0.0   ;;  %vm630_vm0 = vmmov 0   ;;  %v87_v1 = vld [vmem:[#allocation5 + $0x78] sm:$0xff]  ;;  %v86_v2 = vld [vmem:[#allocation5 + $0x70] sm:$0xff] }
  0x34   :  { %401 = vmatprep.subr.mxu0 %v629_v0  ;;  %433 = vmatprep.mubr.msk.f32.mxu0 %vm630_vm0, %v629_v0  ;;  %v85_v3 = vld [vmem:[#allocation5 + $0x68] sm:$0xff]  ;;  %v84_v4 = vld [vmem:[#allocation5 + $0x60] sm:$0xff]  ;;  %v174_v5 = vld [vmem:[#allocation7 + $0x78] sm:$0xff]  ;;  %s631_s2 = smov [#allocation10]  }
  0x35   :  { %436 = vmatprep.subr.mxu1 %v629_v0  ;;  %468 = vmatprep.mubr.msk.f32.mxu1 %vm630_vm0, %v629_v0  ;;  %v83_v6 = vld [vmem:[#allocation5 + $0x58] sm:$0xff]  ;;  %v173_v7 = vld [vmem:[#allocation7 + $0x70] sm:$0xff]  ;;  %v172_v8 = vld [vmem:[#allocation7 + $0x68] sm:$0xff]  ;;  %s339_s3 = sshll.u32 %s631_s2, 4  ;;  %s340_s3 = int_to_ptr.vmem [resolvable:$true] %s339_s3 }
  0x36   :  { %402 = vmatpush3.msra.mxu0 %v87_v1  ;;  %437 = vmatpush3.msra.mxu1 %v174_v5  ;;  %v82_v9 = vld [vmem:[#allocation5 + $0x50] sm:$0xff]  ;;  %v171_v10 = vld [vmem:[#allocation7 + $0x60] sm:$0xff]  ;;  %v81_v11 = vld [vmem:[#allocation5 + $0x48] sm:$0xff]  ;;  %s595_s9 = scalar_lea.vmem %s340_s3, 128  ;;  %p600_p7 = scmp.lt.s32.totalorder %s340_s3, %s340_s3 }
  0x37   :  { %403 = vmatprep.subr.mxu0 %v629_v0  ;;  %438 = vmatprep.subr.mxu1 %v629_v0  ;;  %v170_v12 = vld [vmem:[#allocation7 + $0x58] sm:$0xff]  ;;  %v80_v13 = vld [vmem:[#allocation5 + $0x40] sm:$0xff]  ;;  %v169_v14 = vld [vmem:[#allocation7 + $0x50] sm:$0xff]  ;;  %p596_p6 = scmp.ne.s32.totalorder %s340_s3, %s595_s9  ;;  %p601_p8 = scmp.lt.s32.totalorder %s595_s9, %s595_s9 }
  0x38   :  { %404 = vmatpush3.msra.mxu0 %v86_v2  ;;  %439 = vmatpush3.msra.mxu1 %v173_v7  ;;  %v79_v15 = vld [vmem:[#allocation5 + $0x38] sm:$0xff]  ;;  %v168_v16 = vld [vmem:[#allocation7 + $0x48] sm:$0xff]  ;;  %v78_v17 = vld [vmem:[#allocation5 + $0x30] sm:$0xff] }
  0x39   :  { %405 = vmatprep.subr.mxu0 %v629_v0  ;;  %440 = vmatprep.subr.mxu1 %v629_v0  ;;  %v167_v18 = vld [vmem:[#allocation7 + $0x40] sm:$0xff]  ;;  %v77_v19 = vld [vmem:[#allocation5 + $0x28] sm:$0xff]  ;;  %v166_v20 = vld [vmem:[#allocation7 + $0x38] sm:$0xff]  ;;  %p602_p9 = por %p601_p8, %p600_p7 }
  0x3a   :  { %406 = vmatpush3.msra.mxu0 %v85_v3  ;;  %441 = vmatpush3.msra.mxu1 %v172_v8  ;;  %v76_v21 = vld [vmem:[#allocation5 + $0x20] sm:$0xff]  ;;  %v165_v22 = vld [vmem:[#allocation7 + $0x30] sm:$0xff]  ;;  %v75_v23 = vld [vmem:[#allocation5 + $0x18] sm:$0xff] }
  0x3b   :  { %407 = vmatprep.subr.mxu0 %v629_v0  ;;  %442 = vmatprep.subr.mxu1 %v629_v0  ;;  %v164_v24 = vld [vmem:[#allocation7 + $0x28] sm:$0xff]  ;;  %v74_v25 = vld [vmem:[#allocation5 + $0x10] sm:$0xff]  ;;  %v163_v26 = vld [vmem:[#allocation7 + $0x20] sm:$0xff]  ;;  %p603_p10 = pnand %p602_p9, %p596_p6 }
  0x3c   :  { %408 = vmatpush3.msra.mxu0 %v84_v4  ;;  %443 = vmatpush3.msra.mxu1 %v171_v10  ;;  %v73_v27 = vld [vmem:[#allocation5 + $0x8] sm:$0xff]  ;;  %v162_v28 = vld [vmem:[#allocation7 + $0x18] sm:$0xff]  ;;  %v72_v29 = vld [vmem:[#allocation5] sm:$0xff] }
  0x3d   :  { %409 = vmatprep.subr.mxu0 %v629_v0  ;;  %444 = vmatprep.subr.mxu1 %v629_v0  ;;  %v71_v30 = vld [vmem:[#allocation2] sm:$0xff]  ;;  %v161_v31 = vld [vmem:[#allocation7 + $0x10] sm:$0xff]  ;;  %v160_v32 = vld [vmem:[#allocation7 + $0x8] sm:$0xff] }
  0x3e   :  { %410 = vmatpush3.msra.mxu0 %v83_v6  ;;  %445 = vmatpush3.msra.mxu1 %v170_v12  ;;  %v159_v33 = vld [vmem:[#allocation7] sm:$0xff]  ;;  %v261_v34 = vld [vmem:[#allocation8 + $0x78] sm:$0xff]  ;;  %v260_v35 = vld [vmem:[#allocation8 + $0x70] sm:$0xff] }
  0x3f   :  { %411 = vmatprep.subr.mxu0 %v629_v0  ;;  %446 = vmatprep.subr.mxu1 %v629_v0  ;;  %v259_v36 = vld [vmem:[#allocation8 + $0x68] sm:$0xff]  ;;  %v258_v37 = vld [vmem:[#allocation8 + $0x60] sm:$0xff]  ;;  %v257_v38 = vld [vmem:[#allocation8 + $0x58] sm:$0xff] }
  0x40   :  { %412 = vmatpush3.msra.mxu0 %v82_v9  ;;  %447 = vmatpush3.msra.mxu1 %v169_v14  ;;  %v256_v39 = vld [vmem:[#allocation8 + $0x50] sm:$0xff]  ;;  %v255_v40 = vld [vmem:[#allocation8 + $0x48] sm:$0xff]  ;;  %v254_v41 = vld [vmem:[#allocation8 + $0x40] sm:$0xff] }
  0x41   :  { %413 = vmatprep.subr.mxu0 %v629_v0  ;;  %448 = vmatprep.subr.mxu1 %v629_v0  ;;  %v253_v42 = vld [vmem:[#allocation8 + $0x38] sm:$0xff]  ;;  %v252_v43 = vld [vmem:[#allocation8 + $0x30] sm:$0xff]  ;;  %v251_v44 = vld [vmem:[#allocation8 + $0x28] sm:$0xff] }
  0x42   :  { %414 = vmatpush3.msra.mxu0 %v81_v11  ;;  %449 = vmatpush3.msra.mxu1 %v168_v16  ;;  %v250_v45 = vld [vmem:[#allocation8 + $0x20] sm:$0xff]  ;;  %v249_v46 = vld [vmem:[#allocation8 + $0x18] sm:$0xff]  ;;  %v248_v47 = vld [vmem:[#allocation8 + $0x10] sm:$0xff] }
  0x43   :  { %415 = vmatprep.subr.mxu0 %v629_v0  ;;  %450 = vmatprep.subr.mxu1 %v629_v0  ;;  %v247_v51 = vld [vmem:[#allocation8 + $0x8] sm:$0xff]  ;;  %v246_v52 = vld [vmem:[#allocation8] sm:$0xff] }
  0x44   :  { %416 = vmatpush3.msra.mxu0 %v80_v13  ;;  %451 = vmatpush3.msra.mxu1 %v167_v18 }
  0x45   :  { %417 = vmatprep.subr.mxu0 %v629_v0  ;;  %452 = vmatprep.subr.mxu1 %v629_v0 }
  0x46   :  { %418 = vmatpush3.msra.mxu0 %v79_v15  ;;  %453 = vmatpush3.msra.mxu1 %v166_v20 }
  0x47   :  { %419 = vmatprep.subr.mxu0 %v629_v0  ;;  %454 = vmatprep.subr.mxu1 %v629_v0 }
  0x48   :  { %420 = vmatpush3.msra.mxu0 %v78_v17  ;;  %455 = vmatpush3.msra.mxu1 %v165_v22 }
  0x49   :  { %421 = vmatprep.subr.mxu0 %v629_v0  ;;  %456 = vmatprep.subr.mxu1 %v629_v0 }
  0x4a   :  { %422 = vmatpush3.msra.mxu0 %v77_v19  ;;  %457 = vmatpush3.msra.mxu1 %v164_v24 }
  0x4b   :  { %423 = vmatprep.subr.mxu0 %v629_v0  ;;  %458 = vmatprep.subr.mxu1 %v629_v0 }
  0x4c   :  { %424 = vmatpush3.msra.mxu0 %v76_v21  ;;  %459 = vmatpush3.msra.mxu1 %v163_v26 }
  0x4d   :  { %425 = vmatprep.subr.mxu0 %v629_v0  ;;  %460 = vmatprep.subr.mxu1 %v629_v0 }
  0x4e   :  { %426 = vmatpush3.msra.mxu0 %v75_v23  ;;  %461 = vmatpush3.msra.mxu1 %v162_v28 }
  0x4f   :  { %427 = vmatprep.subr.mxu0 %v629_v0  ;;  %462 = vmatprep.subr.mxu1 %v629_v0 }
  0x50   :  { %428 = vmatpush3.msra.mxu0 %v74_v25  ;;  %463 = vmatpush3.msra.mxu1 %v161_v31 }
  0x51   :  { %429 = vmatprep.subr.mxu0 %v629_v0  ;;  %464 = vmatprep.subr.mxu1 %v629_v0 }
  0x52   :  { %430 = vmatpush3.msra.mxu0 %v73_v27  ;;  %465 = vmatpush3.msra.mxu1 %v160_v32 }
  0x53   :  { %431 = vmatprep.subr.mxu0 %v629_v0  ;;  %466 = vmatprep.subr.mxu1 %v629_v0 }
  0x54   :  { %432 = vmatpush3.msra.mxu0 %v72_v29  ;;  %467 = vmatpush3.msra.mxu1 %v159_v33 }
  0x55   :  { %434 = vmatmul.mubr.f32.vlgmr.msra.gmra.mxu0 %v71_v30  ;;  %471 = vmatprep.subr.mxu0 %v629_v0 }
  0x56   :  { %503 = vmatprep.mubr.msk.f32.mxu0 %vm630_vm0, %v629_v0  ;;  %472 = vmatpush3.msra.mxu0 %v261_v34 }
  0x57   :  { %473 = vmatprep.subr.mxu0 %v629_v0 }
  0x58   :  { %474 = vmatpush3.msra.mxu0 %v260_v35 }
  0x59   :  { %475 = vmatprep.subr.mxu0 %v629_v0 }
  0x5a   :  { %476 = vmatpush3.msra.mxu0 %v259_v36 }
  0x5b   :  { %477 = vmatprep.subr.mxu0 %v629_v0 }
  0x5c   :  { %478 = vmatpush3.msra.mxu0 %v258_v37 }
  0x5d   :  { %479 = vmatprep.subr.mxu0 %v629_v0 }
  0x5e   :  { %480 = vmatpush3.msra.mxu0 %v257_v38 }
  0x5f   :  { %481 = vmatprep.subr.mxu0 %v629_v0 }
  0x60   :  { %482 = vmatpush3.msra.mxu0 %v256_v39 }
  0x61   :  { %483 = vmatprep.subr.mxu0 %v629_v0 }
  0x62   :  { %484 = vmatpush3.msra.mxu0 %v255_v40 }
  0x63   :  { %485 = vmatprep.subr.mxu0 %v629_v0 }
  0x64   :  { %486 = vmatpush3.msra.mxu0 %v254_v41 }
  0x65   :  { %487 = vmatprep.subr.mxu0 %v629_v0 }
  0x66   :  { %488 = vmatpush3.msra.mxu0 %v253_v42 }
  0x67   :  { %489 = vmatprep.subr.mxu0 %v629_v0 }
  0x68   :  { %490 = vmatpush3.msra.mxu0 %v252_v43 }
  0x69   :  { %491 = vmatprep.subr.mxu0 %v629_v0 }
  0x6a   :  { %492 = vmatpush3.msra.mxu0 %v251_v44 }
  0x6b   :  { %493 = vmatprep.subr.mxu0 %v629_v0 }
  0x6c   :  { %494 = vmatpush3.msra.mxu0 %v250_v45 }
  0x6d   :  { %495 = vmatprep.subr.mxu0 %v629_v0 }
  0x6e   :  { %496 = vmatpush3.msra.mxu0 %v249_v46 }
  0x6f   :  { %497 = vmatprep.subr.mxu0 %v629_v0 }
  0x70   :  { %498 = vmatpush3.msra.mxu0 %v248_v47 }
  0x71   :  { %499 = vmatprep.subr.mxu0 %v629_v0 }
  0x72   :  { %500 = vmatpush3.msra.mxu0 %v247_v51 }
  0x73   :  { %501 = vmatprep.subr.mxu0 %v629_v0 }
  0x74   :  { %502 = vmatpush3.msra.mxu0 %v246_v52 }
 0x115   :  { %v154_v48 = vpop.f32.mrf.mxu0 }
 0x116   :  { %v158_v49 = vmax.f32 %v154_v48, 0.0 }
 0x117   :  { %v435_v50 = vpop.f32.mrf.mxu0 }
 0x118   :  { %469 = vmatmul.mubr.f32.vlgmr.msra.gmra.mxu1 %v158_v49 }
 0x1d8   :  { %v241_v53 = vpop.f32.mrf.mxu1 }
 0x1d9   :  { %v245_v54 = vmax.f32 %v241_v53, 0.0 }
 0x1da   :  { %v470_v55 = vpop.f32.mrf.mxu1 }
 0x1db   :  { %504 = vmatmul.mubr.f32.vlgmr.msra.gmra.mxu0 %v245_v54 }
 0x29b   :  { %v328_v56 = vpop.f32.mrf.mxu0 }
 0x29c   :  { %332 = vst [vmem:[#allocation10] sm:$0xff] %v328_v56 }
 0x29d   :  { %v505_v57 = vpop.f32.mrf.mxu0 }
 0x29e   :  { %606 = shalt.err (!%p603_p10)
}
 0x29f   :  { %342 = dma.vmem_to_hbm [thread:$0]  %s340_s3, 128, %s739_s4, [#allocation4]  }
 0x2a0   :  { %621 = dma.done.wait [#allocation4], 128  }
 0x2a1   :  { %622 = vsyncadd [#allocation4], 4294967168 }
 0x2a2   :  { %346 = vsyncpa [#allocation3], 1 }
 0x2a3   :  { %347 = vsyncpa [#allocation6], 1 }
 0x2a4   :  { %348 = vsyncpa [#allocation9], 1 }
 0x2a5   :  { %349 = vsyncpa [#allocation4], 1 }

</bundles_post_ra>
